<compile_context>
chip_gen: v7x
topology: tpu7x:2x2x1
jax: 0.10.0
libtpu: 0.0.40
codegen_flags: <defaults>
</compile_context>

<pallas_src>
import functools

import jax
import jax.numpy as jnp
from jax import lax
from jax.experimental import pallas as pl
from jax.experimental.pallas import tpu as pltpu


def _infonce_kernel(anchor_ref, positive_ref, logits_ref, ce_ref,
                    a_cache, m_sc, l_sc, d_sc, *,
                    inv_temperature, matmul_dtype, tile, resident_positive):
    i = pl.program_id(0)            # row tile (anchor)   -- "parallel"
    j = pl.program_id(1)            # col tile (positive) -- reduction, innermost
    n_j = pl.num_programs(1)

    eps2 = jnp.float32(1e-24)       # F.normalize eps=1e-12, squared

    # ---- per-row-tile init: normalize + scale + cast the anchor ONCE --------
    @pl.when(j == 0)
    def _init():
        a = anchor_ref[...].astype(jnp.float32)                      # (T, D)
        a_scale = lax.rsqrt(
            jnp.maximum(jnp.sum(a * a, axis=-1, keepdims=True), eps2))
        a_scale = a_scale * jnp.float32(inv_temperature)             # fold 1/T
        a_cache[...] = (a * a_scale).astype(matmul_dtype)
        m_sc[...] = jnp.full_like(m_sc, -jnp.inf)
        l_sc[...] = jnp.zeros_like(l_sc)

    # ---- positive tile: sliced from a VMEM-resident (B, D) block, or streamed
    if resident_positive:
        start = pl.multiple_of(j * tile, tile)
        p = positive_ref[pl.ds(start, tile), :].astype(jnp.float32)  # (T, D)
    else:
        p = positive_ref[...].astype(jnp.float32)                    # (T, D)
    p_scale = lax.rsqrt(
        jnp.maximum(jnp.sum(p * p, axis=-1, keepdims=True), eps2))
    p_n = (p * p_scale).astype(matmul_dtype)

    # NT matmul (contract last dims of both): no transpose / relayout,
    # f32 MXU accumulation.
    logits = lax.dot_general(
        a_cache[...], p_n,
        dimension_numbers=(((1,), (1,)), ((), ())),
        preferred_element_type=jnp.float32)                          # (T, T)
    logits_ref[...] = logits

    # ---- flash-style online logsumexp across column tiles -------------------
    m_prev = m_sc[...]
    m_new = jnp.maximum(m_prev, jnp.max(logits, axis=-1, keepdims=True))
    l_sc[...] = (l_sc[...] * jnp.exp(m_prev - m_new)
                 + jnp.sum(jnp.exp(logits - m_new), axis=-1, keepdims=True))
    m_sc[...] = m_new

    # ---- diagonal logits (labels = arange(B)) live in the j == i tile; take
    #      them from the MXU result so CE matches the returned logits exactly.
    @pl.when(j == i)
    def _diag():
        rows = lax.broadcasted_iota(jnp.int32, logits.shape, 0)
        cols = lax.broadcasted_iota(jnp.int32, logits.shape, 1)
        d_sc[...] = jnp.sum(jnp.where(rows == cols, logits, 0.0),
                            axis=-1, keepdims=True)

    # ---- finalize: per-example cross entropy for this row tile --------------
    @pl.when(j == n_j - 1)
    def _fin():
        lse = m_sc[...] + jnp.log(l_sc[...])                          # (T, 1)
        ce_ref[...] = lse - d_sc[...]                                 # (T, 1)


def _rup(x, m):
    return ((x + m - 1) // m) * m


def _vmem_budget_bytes():
    """Generation-aware VMEM budget with headroom (v7x 64 MiB, v5e/v6e 128 MiB)."""
    try:
        cap = int(pltpu.get_tpu_info().vmem_capacity_bytes)
    except Exception:
        cap = 64 << 20          # assume the smallest (v7x per-TC) VMEM
    return int(cap * 0.8)


def _vmem_need_bytes(B, D, tile, in_bytes, mm_bytes, resident_positive,
                     pos_buffers):
    """Conservative VMEM footprint estimate (lane-padded) for one config."""
    d_pad = _rup(max(D, 1), 128)
    t_pad = _rup(max(tile, 1), 128)
    need = 0
    need += 2 * tile * d_pad * in_bytes                       # anchor (2 bufs)
    if resident_positive:
        need += 2 * _rup(B, 8) * d_pad * in_bytes             # resident positives
    else:
        need += pos_buffers * tile * d_pad * in_bytes         # streamed positives
    need += 2 * tile * t_pad * 4                              # logits tile (2 bufs)
    need += 2 * tile * 128 * 4                                # per-example CE out
    need += tile * d_pad * mm_bytes                           # cached anchor scratch
    need += 3 * tile * 128 * 4                                # m / l / diag scratch
    need += 2 << 20                                           # slack / internals
    return need


def _pick_tile(B, D, in_bytes, mm_bytes, budget, pos_buffers):
    cands = [t for t in (1024, 512, 256, 128) if B % t == 0]
    # Prefer >= 2 row tiles so both v7x TensorCores get work on the parallel
    # axis; among those, take the largest (>= 256 fills the v6e/v7x MXU).
    pref = [t for t in cands if B // t >= 2]
    order = pref + [t for t in cands if t not in pref]
    for t in order:
        if _vmem_need_bytes(B, D, t, in_bytes, mm_bytes, False,
                            pos_buffers) <= budget:
            return t
    return None


def infonce_v2(anchor, positive, temperature, *,
               matmul_dtype=jnp.bfloat16, tile=None, resident_positive=None):
    """Returns (loss, logits) matching PyTorch InfoNCE_v2.forward.

    matmul_dtype=jnp.float32 gives a full-precision path (slower on the
    bf16-native MXU); the default bf16 path quantizes the streamed inputs and
    MXU operands to bf16 while accumulating in f32.
    """
    assert anchor.ndim == 2 and anchor.shape == positive.shape
    B, D = anchor.shape

    # Feed the kernel matmul_dtype inputs: halves HBM traffic for the positive
    # stream and the input buffers, with no extra loss vs. the bf16 MXU path.
    if matmul_dtype == jnp.bfloat16:
        anchor = anchor.astype(jnp.bfloat16)
        positive = positive.astype(jnp.bfloat16)

    in_bytes = anchor.dtype.itemsize
    mm_bytes = jnp.dtype(matmul_dtype).itemsize
    budget = _vmem_budget_bytes()
    pos_buffers = 3     # extra pipeline depth for the only per-step-changing input

    if tile is None:
        tile = _pick_tile(B, D, in_bytes, mm_bytes, budget, pos_buffers)
        if tile is None:
            # TODO(synk): mask ragged tail tiles so B not divisible by 128 can
            # still be tiled; falls back to a single (B, B) block for now.
            tile = B
    assert B % tile == 0, "tile must divide the batch size"
    assert tile == B or tile % 128 == 0, "tile must be a multiple of 128 (or == B)"
    n = B // tile

    if resident_positive is None:
        resident_positive = (
            _vmem_need_bytes(B, D, tile, in_bytes, mm_bytes, True,
                             pos_buffers) <= budget)

    need = _vmem_need_bytes(B, D, tile, in_bytes, mm_bytes, resident_positive,
                            pos_buffers)
    # Never clamp below the actual requirement; otherwise stay within budget.
    vmem_limit = int(max(min(budget, max(need, 32 << 20)), need))

    if resident_positive:
        # Whole positive matrix resident in VMEM (constant block index ->
        # fetched once per core), normalized tile-by-tile inside the kernel.
        pos_spec = pl.BlockSpec((B, D), lambda i, j: (0, 0))
    else:
        pos_spec = pl.BlockSpec((tile, D), lambda i, j: (j, 0),
                                pipeline_mode=pl.Buffered(pos_buffers))

    kernel = functools.partial(
        _infonce_kernel,
        inv_temperature=1.0 / float(temperature),
        matmul_dtype=matmul_dtype,
        tile=tile,
        resident_positive=resident_positive)

    logits, ce = pl.pallas_call(
        kernel,
        out_shape=(
            jax.ShapeDtypeStruct((B, B), jnp.float32),   # logits
            jax.ShapeDtypeStruct((B, 1), jnp.float32),   # per-example CE
        ),
        grid_spec=pltpu.PrefetchScalarGridSpec(
            num_scalar_prefetch=0,
            grid=(n, n),
            in_specs=[
                pl.BlockSpec((tile, D), lambda i, j: (i, 0)),   # anchor rows
                pos_spec,                                       # positive rows
            ],
            out_specs=(
                pl.BlockSpec((tile, tile), lambda i, j: (i, j)),  # lane-dense
                pl.BlockSpec((tile, 1), lambda i, j: (i, 0)),     # per-example CE
            ),
            scratch_shapes=[
                pltpu.VMEM((tile, D), matmul_dtype),   # cached normalized anchor
                pltpu.VMEM((tile, 1), jnp.float32),    # running max
                pltpu.VMEM((tile, 1), jnp.float32),    # running sum-exp
                pltpu.VMEM((tile, 1), jnp.float32),    # diagonal logits
            ],
        ),
        compiler_params=pltpu.CompilerParams(
            dimension_semantics=("parallel", "arbitrary"),
            vmem_limit_bytes=vmem_limit,
        ),
        cost_estimate=pl.CostEstimate(
            flops=2 * B * B * D + 8 * B * D,
            transcendentals=B * B + 4 * B,
            bytes_accessed=(B * D * in_bytes
                            + (1 if resident_positive else n) * B * D * in_bytes
                            + B * B * 4 + B * 4),
        ),
    )(anchor, positive)

    loss = jnp.mean(ce)
    return loss, logits


def _reference(anchor, positive, temperature):
    eps = 1e-12
    a = anchor / jnp.maximum(jnp.linalg.norm(anchor, axis=-1, keepdims=True), eps)
    p = positive / jnp.maximum(jnp.linalg.norm(positive, axis=-1, keepdims=True), eps)
    logits = (a @ p.T) / temperature
    b = anchor.shape[0]
    logp = jax.nn.log_softmax(logits, axis=-1)
    loss = -jnp.mean(logp[jnp.arange(b), jnp.arange(b)])
    return loss, logits


if __name__ == "__main__":
    key = jax.random.PRNGKey(0)
    k1, k2, k3, k4 = jax.random.split(key, 4)
    temperature = 0.1

    # Test 1: tiny single-tile case, full-f32 matmul -> tight tolerance.
    B1, D1 = 8, 32
    a1 = jax.random.normal(k1, (B1, D1), dtype=jnp.float32)
    p1 = jax.random.normal(k2, (B1, D1), dtype=jnp.float32)
    loss1, logits1 = infonce_v2(a1, p1, temperature, matmul_dtype=jnp.float32)
    jax.block_until_ready((loss1, logits1))
    ref_loss1, ref_logits1 = _reference(a1, p1, temperature)
    assert jnp.allclose(loss1, ref_loss1, atol=1e-4, rtol=1e-5)
    assert jnp.allclose(logits1, ref_logits1, atol=1e-4, rtol=1e-5)

    # Test 2: multi-tile grid (2x2 tiles of 128), bf16 inputs/operands with f32
    # accumulation, positive resident in VMEM -> relaxed tolerance.
    B2, D2 = 256, 64
    a2 = jax.random.normal(k3, (B2, D2), dtype=jnp.float32)
    p2 = jax.random.normal(k4, (B2, D2), dtype=jnp.float32)
    loss2, logits2 = infonce_v2(a2, p2, temperature)
    jax.block_until_ready((loss2, logits2))
    ref_loss2, ref_logits2 = _reference(a2, p2, temperature)
    assert jnp.allclose(loss2, ref_loss2, atol=5e-2)
    assert jnp.allclose(logits2, ref_logits2, atol=2e-1)

    # Test 3: same shapes, force the streamed-positive path (Buffered(3)
    # pipelining) used when the positive matrix does not fit VMEM.
    loss3, logits3 = infonce_v2(a2, p2, temperature, tile=128,
                                resident_positive=False)
    jax.block_until_ready((loss3, logits3))
    assert jnp.allclose(loss3, ref_loss2, atol=5e-2)
    assert jnp.allclose(logits3, ref_logits2, atol=2e-1)

    print("KERNEL_OK")
</pallas_src>

<mosaic_0001>
module attributes {stable_mosaic.version = 11 : i64} {
  func.func @_infonce_kernel(%arg0: i32, %arg1: i32, %arg2: memref<8x32xf32, #tpu.memory_space<vmem>>, %arg3: memref<8x32xf32, #tpu.memory_space<vmem>>, %arg4: memref<8x8xf32, #tpu.memory_space<vmem>>, %arg5: memref<8x1xf32, #tpu.memory_space<vmem>>, %arg6: memref<8x32xf32, #tpu.memory_space<vmem>>, %arg7: memref<8x1xf32, #tpu.memory_space<vmem>>, %arg8: memref<8x1xf32, #tpu.memory_space<vmem>>, %arg9: memref<8x1xf32, #tpu.memory_space<vmem>>) attributes {dimension_semantics = [#tpu.dimension_semantics<parallel>, #tpu.dimension_semantics<arbitrary>], iteration_bounds = array<i64: 1, 1>, scalar_prefetch = 0 : i64, scratch_operands = 4 : i64, tpu.core_type = #tpu.core_type<tc>, window_params = [{transform_indices = @transform_0, window_bounds = array<i64: 8, 32>}, {pipeline_mode = #tpu.pipeline_mode<synchronous>, transform_indices = @transform_1, window_bounds = array<i64: 8, 32>}, {transform_indices = @transform_2, window_bounds = array<i64: 8, 8>}, {transform_indices = @transform_3, window_bounds = array<i64: 8, 1>}]} {
    %c0_i32 = arith.constant 0 : i32
    %0 = arith.cmpi eq, %arg1, %c0_i32 : i32
    %1 = arith.extui %0 : i1 to i32
    %cst = arith.constant 1.000000e-24 : f32
    %c0_i32_0 = arith.constant 0 : i32
    %2 = arith.cmpi ne, %1, %c0_i32_0 : i32
    scf.if %2 {
      %c0_21 = arith.constant 0 : index
      %c0_22 = arith.constant 0 : index
      %40 = vector.load %arg2[%c0_21, %c0_22] : memref<8x32xf32, #tpu.memory_space<vmem>>, vector<8x32xf32>
      %41 = arith.mulf %40, %40 : vector<8x32xf32>
      %cst_23 = arith.constant dense<0.000000e+00> : vector<8xf32>
      %42 = vector.multi_reduction <add>, %41, %cst_23 [1] : vector<8x32xf32> to vector<8xf32>
      %43 = vector.shape_cast %42 : vector<8xf32> to vector<8x1xf32>
      %44 = vector.broadcast %cst : f32 to vector<8x1xf32>
      %45 = arith.maximumf %43, %44 : vector<8x1xf32>
      %46 = math.rsqrt %45 : vector<8x1xf32>
      %cst_24 = arith.constant 1.000000e+01 : f32
      %47 = vector.broadcast %cst_24 : f32 to vector<8x1xf32>
      %48 = arith.mulf %46, %47 : vector<8x1xf32>
      %49 = vector.broadcast %48 : vector<8x1xf32> to vector<8x32xf32>
      %50 = arith.mulf %40, %49 : vector<8x32xf32>
      %c0_25 = arith.constant 0 : index
      %c0_26 = arith.constant 0 : index
      %51 = vector.load %arg6[%c0_25, %c0_26] : memref<8x32xf32, #tpu.memory_space<vmem>>, vector<8x32xf32>
      tpu.vector_store %arg6[%c0_25, %c0_26], %50 {strides = array<i32>} : memref<8x32xf32, #tpu.memory_space<vmem>>, vector<8x32xf32>,
      %cst_27 = arith.constant 0xFF800000 : f32
      %52 = vector.broadcast %cst_27 : f32 to vector<8x1xf32>
      %c0_28 = arith.constant 0 : index
      %c0_29 = arith.constant 0 : index
      %53 = vector.load %arg7[%c0_28, %c0_29] : memref<8x1xf32, #tpu.memory_space<vmem>>, vector<8x1xf32>
      tpu.vector_store %arg7[%c0_28, %c0_29], %52 {strides = array<i32>} : memref<8x1xf32, #tpu.memory_space<vmem>>, vector<8x1xf32>,
      %cst_30 = arith.constant 0.000000e+00 : f32
      %54 = vector.broadcast %cst_30 : f32 to vector<8x1xf32>
      %c0_31 = arith.constant 0 : index
      %c0_32 = arith.constant 0 : index
      %55 = vector.load %arg8[%c0_31, %c0_32] : memref<8x1xf32, #tpu.memory_space<vmem>>, vector<8x1xf32>
      tpu.vector_store %arg8[%c0_31, %c0_32], %54 {strides = array<i32>} : memref<8x1xf32, #tpu.memory_space<vmem>>, vector<8x1xf32>,
    } else {
    }
    %c8_i32 = arith.constant 8 : i32
    %3 = arith.muli %arg1, %c8_i32 : i32
    %4 = tpu.assume_multiple %3, 8 : i32
    %5 = arith.index_cast %4 : i32 to index
    %c0 = arith.constant 0 : index
    %6 = vector.load %arg3[%5, %c0] : memref<8x32xf32, #tpu.memory_space<vmem>>, vector<8x32xf32>
    %7 = arith.mulf %6, %6 : vector<8x32xf32>
    %cst_1 = arith.constant dense<0.000000e+00> : vector<8xf32>
    %8 = vector.multi_reduction <add>, %7, %cst_1 [1] : vector<8x32xf32> to vector<8xf32>
    %9 = vector.shape_cast %8 : vector<8xf32> to vector<8x1xf32>
    %cst_2 = arith.constant 1.000000e-24 : f32
    %10 = vector.broadcast %cst_2 : f32 to vector<8x1xf32>
    %11 = arith.maximumf %9, %10 : vector<8x1xf32>
    %12 = math.rsqrt %11 : vector<8x1xf32>
    %13 = vector.broadcast %12 : vector<8x1xf32> to vector<8x32xf32>
    %14 = arith.mulf %6, %13 : vector<8x32xf32>
    %c0_3 = arith.constant 0 : index
    %c0_4 = arith.constant 0 : index
    %15 = vector.load %arg6[%c0_3, %c0_4] : memref<8x32xf32, #tpu.memory_space<vmem>>, vector<8x32xf32>
    %cst_5 = arith.constant dense<0.000000e+00> : vector<8x8xf32>
    %16 = tpu.matmul %15, %14, %cst_5 {dimension_numbers = #tpu.dot_dimension_numbers<[1], [1], [0], [0], [0, 0, 1, 0], [], []>} : vector<8x32xf32>, vector<8x32xf32>, vector<8x8xf32> -> vector<8x8xf32>
    %c0_6 = arith.constant 0 : index
    %c0_7 = arith.constant 0 : index
    %17 = vector.load %arg4[%c0_6, %c0_7] : memref<8x8xf32, #tpu.memory_space<vmem>>, vector<8x8xf32>
    tpu.vector_store %arg4[%c0_6, %c0_7], %16 {strides = array<i32>} : memref<8x8xf32, #tpu.memory_space<vmem>>, vector<8x8xf32>,
    %c0_8 = arith.constant 0 : index
    %c0_9 = arith.constant 0 : index
    %18 = vector.load %arg7[%c0_8, %c0_9] : memref<8x1xf32, #tpu.memory_space<vmem>>, vector<8x1xf32>
    %cst_10 = arith.constant dense<0xFF800000> : vector<8xf32>
    %19 = vector.multi_reduction <maximumf>, %16, %cst_10 [1] : vector<8x8xf32> to vector<8xf32>
    %20 = vector.shape_cast %19 : vector<8xf32> to vector<8x1xf32>
    %21 = arith.maximumf %18, %20 : vector<8x1xf32>
    %c0_11 = arith.constant 0 : index
    %c0_12 = arith.constant 0 : index
    %22 = vector.load %arg8[%c0_11, %c0_12] : memref<8x1xf32, #tpu.memory_space<vmem>>, vector<8x1xf32>
    %23 = arith.subf %18, %21 : vector<8x1xf32>
    %24 = math.exp %23 : vector<8x1xf32>
    %25 = arith.mulf %22, %24 : vector<8x1xf32>
    %26 = vector.broadcast %21 : vector<8x1xf32> to vector<8x8xf32>
    %27 = arith.subf %16, %26 : vector<8x8xf32>
    %28 = math.exp %27 : vector<8x8xf32>
    %cst_13 = arith.constant dense<0.000000e+00> : vector<8xf32>
    %29 = vector.multi_reduction <add>, %28, %cst_13 [1] : vector<8x8xf32> to vector<8xf32>
    %30 = vector.shape_cast %29 : vector<8xf32> to vector<8x1xf32>
    %31 = arith.addf %25, %30 : vector<8x1xf32>
    %c0_14 = arith.constant 0 : index
    %c0_15 = arith.constant 0 : index
    %32 = vector.load %arg8[%c0_14, %c0_15] : memref<8x1xf32, #tpu.memory_space<vmem>>, vector<8x1xf32>
    tpu.vector_store %arg8[%c0_14, %c0_15], %31 {strides = array<i32>} : memref<8x1xf32, #tpu.memory_space<vmem>>, vector<8x1xf32>,
    %c0_16 = arith.constant 0 : index
    %c0_17 = arith.constant 0 : index
    %33 = vector.load %arg7[%c0_16, %c0_17] : memref<8x1xf32, #tpu.memory_space<vmem>>, vector<8x1xf32>
    tpu.vector_store %arg7[%c0_16, %c0_17], %21 {strides = array<i32>} : memref<8x1xf32, #tpu.memory_space<vmem>>, vector<8x1xf32>,
    %34 = arith.cmpi eq, %arg1, %arg0 : i32
    %35 = arith.extui %34 : i1 to i32
    %c0_i32_18 = arith.constant 0 : i32
    %36 = arith.cmpi ne, %35, %c0_i32_18 : i32
    scf.if %36 {
      %40 = tpu.iota {dimensions = array<i32: 0>} : vector<8x8xi32>
      %41 = tpu.iota {dimensions = array<i32: 1>} : vector<8x8xi32>
      %42 = arith.cmpi eq, %40, %41 : vector<8x8xi32>
      %cst_21 = arith.constant 0.000000e+00 : f32
      %43 = vector.broadcast %cst_21 : f32 to vector<8x8xf32>
      %44 = arith.select %42, %16, %43 : vector<8x8xi1>, vector<8x8xf32>
      %cst_22 = arith.constant dense<0.000000e+00> : vector<8xf32>
      %45 = vector.multi_reduction <add>, %44, %cst_22 [1] : vector<8x8xf32> to vector<8xf32>
      %46 = vector.shape_cast %45 : vector<8xf32> to vector<8x1xf32>
      %c0_23 = arith.constant 0 : index
      %c0_24 = arith.constant 0 : index
      %47 = vector.load %arg9[%c0_23, %c0_24] : memref<8x1xf32, #tpu.memory_space<vmem>>, vector<8x1xf32>
      tpu.vector_store %arg9[%c0_23, %c0_24], %46 {strides = array<i32>} : memref<8x1xf32, #tpu.memory_space<vmem>>, vector<8x1xf32>,
    } else {
    }
    %c0_i32_19 = arith.constant 0 : i32
    %37 = arith.cmpi eq, %arg1, %c0_i32_19 : i32
    %38 = arith.extui %37 : i1 to i32
    %c0_i32_20 = arith.constant 0 : i32
    %39 = arith.cmpi ne, %38, %c0_i32_20 : i32
    scf.if %39 {
      %c0_21 = arith.constant 0 : index
      %c0_22 = arith.constant 0 : index
      %40 = vector.load %arg7[%c0_21, %c0_22] : memref<8x1xf32, #tpu.memory_space<vmem>>, vector<8x1xf32>
      %c0_23 = arith.constant 0 : index
      %c0_24 = arith.constant 0 : index
      %41 = vector.load %arg8[%c0_23, %c0_24] : memref<8x1xf32, #tpu.memory_space<vmem>>, vector<8x1xf32>
      %42 = math.log %41 : vector<8x1xf32>
      %43 = arith.addf %40, %42 : vector<8x1xf32>
      %c0_25 = arith.constant 0 : index
      %c0_26 = arith.constant 0 : index
      %44 = vector.load %arg9[%c0_25, %c0_26] : memref<8x1xf32, #tpu.memory_space<vmem>>, vector<8x1xf32>
      %45 = arith.subf %43, %44 : vector<8x1xf32>
      %c0_27 = arith.constant 0 : index
      %c0_28 = arith.constant 0 : index
      %46 = vector.load %arg5[%c0_27, %c0_28] : memref<8x1xf32, #tpu.memory_space<vmem>>, vector<8x1xf32>
      tpu.vector_store %arg5[%c0_27, %c0_28], %45 {strides = array<i32>} : memref<8x1xf32, #tpu.memory_space<vmem>>, vector<8x1xf32>,
    } else {
    }
    return
  }
  func.func @transform_0(%arg0: i32, %arg1: i32) -> (i32, i32) {
    %c0_i32 = arith.constant 0 : i32
    %c0_i32_0 = arith.constant 0 : i32
    return %arg0, %c0_i32 : i32, i32
  }
  func.func @transform_1(%arg0: i32, %arg1: i32) -> (i32, i32) {
    %c0_i32 = arith.constant 0 : i32
    %c0_i32_0 = arith.constant 0 : i32
    %c0_i32_1 = arith.constant 0 : i32
    return %c0_i32, %c0_i32_0 : i32, i32
  }
  func.func @transform_2(%arg0: i32, %arg1: i32) -> (i32, i32) {
    %c0_i32 = arith.constant 0 : i32
    return %arg0, %arg1 : i32, i32
  }
  func.func @transform_3(%arg0: i32, %arg1: i32) -> (i32, i32) {
    %c0_i32 = arith.constant 0 : i32
    %c0_i32_0 = arith.constant 0 : i32
    return %arg0, %c0_i32 : i32, i32
  }
}

</mosaic_0001>

<bundles_post_ra>
// kernel: tpu_custom_call.1
= control target key start
LH: loop header
LB: loop body
LE: loop exit
PB: predicated region body
PF: predicated region fallthrough
CT: control target
= control target key end

     0   :  { %9 = vsyncpa [#allocation7], 0  ;;  %s397_s0 = inlined_call_operand.hbm [shape: f32[8,32], index: 0, kind: input, shape index: {}]   ;;  %s398_s1 = inlined_call_operand.hbm [shape: f32[8,32], index: 1, kind: input, shape index: {}]   ;;  %s399_s2 = inlined_call_operand.hbm [shape: f32[8,8], index: 2, kind: output, shape index: {0}]   ;;  %s400_s3 = inlined_call_operand.vmem [shape: f32[8,1], index: 3, kind: output, shape index: {1}]  }
   0x1   :  { %10 = vsyncpa [#allocation10], 0 }
   0x2   :  { %11 = vsyncpa [#allocation8], 0  ;;  %s316_s12 = smov [#allocation6]   ;;  %s317_s14 = smov [#allocation9]  }
   0x3   :  { %s18_s13 = sshll.u32 %s316_s12, 4  ;;  %s28_s15 = sshll.u32 %s317_s14, 4  ;;  %s19_s13 = int_to_ptr.vmem [resolvable:$true] %s18_s13  ;;  %s29_s15 = int_to_ptr.vmem [resolvable:$true] %s28_s15 }
   0x4   :  { %s244_s18 = scalar_lea.hbm %s397_s0, 128 }
   0x5   :  { %p245_p0 = scmp.ne.s32.totalorder %s397_s0, %s244_s18  ;;  %p248_p1 = scmp.lt.u32.totalorder %s244_s18, %s397_s0 }
   0x7   :  { %p250_p2 = pnand %p248_p1, %p245_p0 }
   0x9   :  { %253 = shalt.err (!%p250_p2)
}
   0xa   :  { %s254_s23 = scalar_lea.vmem %s19_s13, 128  ;;  %p259_p4 = scmp.lt.s32.totalorder %s19_s13, %s19_s13 }
   0xb   :  { %p255_p3 = scmp.ne.s32.totalorder %s19_s13, %s254_s23  ;;  %p260_p5 = scmp.lt.s32.totalorder %s254_s23, %s254_s23 }
   0xd   :  { %p261_p6 = por %p260_p5, %p259_p4 }
   0xf   :  { %p262_p7 = pnand %p261_p6, %p255_p3 }
  0x11   :  { %265 = shalt.err (!%p262_p7)
}
  0x12   :  { %21 = dma.hbm_to_vmem [thread:$0]  %s397_s0, 128, %s19_s13, [#allocation7]  }
  0x13   :  { %s266_s28 = scalar_lea.hbm %s398_s1, 128 }
  0x14   :  { %p267_p8 = scmp.ne.s32.totalorder %s398_s1, %s266_s28  ;;  %p270_p9 = scmp.lt.u32.totalorder %s266_s28, %s398_s1 }
  0x16   :  { %p272_p10 = pnand %p270_p9, %p267_p8 }
  0x18   :  { %275 = shalt.err (!%p272_p10)
}
  0x19   :  { %s276_s6 = scalar_lea.vmem %s29_s15, 128  ;;  %p281_p12 = scmp.lt.s32.totalorder %s29_s15, %s29_s15 }
  0x1a   :  { %p277_p11 = scmp.ne.s32.totalorder %s29_s15, %s276_s6  ;;  %p282_p13 = scmp.lt.s32.totalorder %s276_s6, %s276_s6 }
  0x1c   :  { %p283_p0 = por %p282_p13, %p281_p12 }
  0x1e   :  { %p284_p1 = pnand %p283_p0, %p277_p11 }
  0x20   :  { %287 = shalt.err (!%p284_p1)
}
  0x21   :  { %31 = dma.hbm_to_vmem [thread:$0]  %s398_s1, 128, %s29_s15, [#allocation10]  }
  0x22   :  { %310 = dma.done.wait [#allocation7], 128  }
  0x23   :  { %311 = vsyncadd [#allocation7], 4294967168 }
  0x24   :  { %312 = dma.done.wait [#allocation10], 128  }
  0x25   :  { %313 = vsyncadd [#allocation10], 4294967168  ;;  %v42_v0 = vld [vmem:[#allocation6] sm:$0xff]  ;;  %vm44_vm0 = vcmask 261120   ;;  %v58_v1 = vld [vmem:[#allocation9] sm:$0xff]  ;;  %vm53_vm1 = vcmask 7168   ;;  %v175_v29 = vlaneseq }
  0x26   :  { %v43_v2 = vmul.f32 %v42_v0, %v42_v0  ;;  %v59_v3 = vmul.f32 %v58_v1, %v58_v1  ;;  %v318_v6 = vmov 0.0   ;;  %vm319_vm2 = vmmov 0   ;;  %s322_s1 = smov [#allocation11]  }
  0x27   :  { %55 = vst.msk [vmem:[#allocation4] sm:$0xff] %vm53_vm1, %v318_v6  ;;  %220 = vmatprep.subr.mxu0 %v318_v6  ;;  %222 = vmatprep.mubr.msk.f32.mxu0 %vm319_vm2, %v318_v6  ;;  %v320_v17 = vmov -inf   ;;  %vm144_vm3 = vcmask 64512   ;;  %v321_v21 = vmov 0   ;;  %v176_v30 = vshrl.u32 %v175_v29, 7  ;;  %s202_s8 = sshll.u32 %s322_s1, 4  ;;  %s203_s8 = int_to_ptr.vmem [resolvable:$true] %s202_s8 }
  0x28   :  { %v45_v4 = vsel %vm44_vm0, %v43_v2, 0.0  ;;  %v61_v5 = vsel %vm44_vm0, %v59_v3, 0.0  ;;  %54 = vst.msk [vmem:[#allocation3] sm:$0xff] %vm53_vm1, %v320_v17  ;;  %232 = vset.pattern.permute.xlu1 %v321_v21  ;;  %233 = vset.pattern.permute.xlu0 %v321_v21  ;;  %v178_v31 = vand.u32 127, %v175_v29  ;;  %s288_s9 = scalar_lea.vmem %s203_s8, 128  ;;  %p293_p3 = scmp.lt.s32.totalorder %s203_s8, %s203_s8 }
  0x29   :  { %46 = vadd.xlane.f32.xlu0 %v45_v4  ;;  %p289_p2 = scmp.ne.s32.totalorder %s203_s8, %s288_s9  ;;  %p294_p4 = scmp.lt.s32.totalorder %s288_s9, %s288_s9 }
  0x2a   :  { %vm179_vm4 = vcmp.eq.s32.totalorder %v176_v30, %v178_v31 }
  0x2b   :  { %p295_p5 = por %p294_p4, %p293_p3 }
  0x2d   :  { %62 = vadd.xlane.f32.xlu0 %v61_v5  ;;  %p296_p6 = pnand %p295_p5, %p289_p2 }
  0x2f   :  { %v146_v22 = vld [vmem:[#allocation3] sm:$0xff] }
  0xb6   :  { %v47_v7 = vpop.xlane.xlu0 %46 }
  0xb7   :  { %v48_v8 = vmax.f32 %v47_v7, 1e-24 }
  0xb9   :  { %234 = vrsqrt.f32 %v48_v8 }
  0xba   :  { %v63_v9 = vpop.xlane.xlu0 %62 }
  0xbb   :  { %v64_v10 = vmax.f32 %v63_v9, 1e-24 }
  0xbd   :  { %236 = vrsqrt.f32 %v64_v10 }
  0xc3   :  { %v235_v11 = vpop.eup %234 }
  0xc4   :  { %v50_v12 = vmul.f32 10.0, %v235_v11 }
  0xc6   :  { %v51_v13 = vmul.f32 %v50_v12, %v42_v0 }
  0xc7   :  { %v237_v14 = vpop.eup %236 }
  0xc8   :  { %52 = vst.msk [vmem:[#allocation2] sm:$0xff] %vm44_vm0, %v51_v13  ;;  %v66_v15 = vmul.f32 %v237_v14, %v58_v1 }
  0xca   :  { %221 = vmatpush3.xpose.msk.msra.mxu0 %vm44_vm0, %v66_v15 }
  0xcf   :  { %v67_v16 = vld [vmem:[#allocation2] sm:$0xff] }
  0xd0   :  { %223 = vmatmul.mubr.msk.f32.vlgmr.msra.gmra.mrb[0].mxu0 %vm44_vm0, %v67_v16 }
 0x1a3   :  { %v140_v18 = vpop.f32.mrb[0].mxu0 }
 0x1a4   :  { %v224_v19 = vpop.f32.mrb[1].mxu0  ;;  %v147_v20 = vsel %vm144_vm3, %v140_v18, -inf  ;;  %145 = vst.msk [vmem:[#allocation11] sm:$0xff] %vm144_vm3, %v140_v18  ;;  %v180_v34 = vsel %vm179_vm4, %v140_v18, 0.0 }
 0x1a5   :  { %148 = vmax.xlane.f32.xlu1 %v147_v20  ;;  %v181_v35 = vsel %vm144_vm3, %v180_v34, 0.0 }
 0x232   :  { %v149_v23 = vpop.xlane.xlu1 %148 }
 0x233   :  { %v150_v24 = vmax.f32 %v146_v22, %v149_v23 }
 0x235   :  { %v152_v25 = vsub.f32 %v146_v22, %v150_v24  ;;  %170 = vst.msk [vmem:[#allocation3] sm:$0xff] %vm53_vm1, %v150_v24  ;;  %158 = vperm.xlu1 %232, %v150_v24  }
 0x2b4   :  { %v159_v26 = vpop.permute.xlu1 %158 }
 0x2b5   :  { %v161_v27 = vsub.f32 %v140_v18, %v159_v26 }
 0x2b7   :  { %v162_v28 = vmul.f32 1.442695, %v161_v27 }
 0x2b9   :  { %238 = vpow2.f32 %v162_v28 }
 0x2c3   :  { %v239_v32 = vpop.eup %238 }
 0x2c4   :  { %v164_v33 = vsel %vm144_vm3, %v239_v32, 0.0 }
 0x2c5   :  { %165 = vadd.xlane.f32.xlu0 %v164_v33 }
 0x2c9   :  { %182 = vadd.xlane.f32.xlu0 %v181_v35 }
 0x2ca   :  { %299 = shalt.err (!%p296_p6)
}
 0x2cb   :  { %s300_s12 = scalar_lea.hbm %s399_s2, 128 }
 0x2cc   :  { %p301_p7 = scmp.ne.s32.totalorder %s399_s2, %s300_s12  ;;  %p304_p8 = scmp.lt.u32.totalorder %s300_s12, %s399_s2 }
 0x2ce   :  { %p306_p9 = pnand %p304_p8, %p301_p7 }
 0x2d0   :  { %309 = shalt.err (!%p306_p9)
}
 0x2d1   :  { %205 = dma.vmem_to_hbm [thread:$0]  %s203_s8, 128, %s399_s2, [#allocation8]   ;;  %v153_v36 = vmul.f32 1.442695, %v152_v25  ;;  %v151_v38 = vld [vmem:[#allocation4] sm:$0xff]  ;;  %v188_v46 = vld [vmem:[#allocation3] sm:$0xff] }
 0x2d3   :  { %240 = vpow2.f32 %v153_v36 }
 0x2dd   :  { %v241_v37 = vpop.eup %240 }
 0x2de   :  { %v155_v39 = vmul.f32 %v241_v37, %v151_v38 }
 0x352   :  { %v166_v40 = vpop.xlane.xlu0 %165 }
 0x353   :  { %v167_v41 = vadd.f32 %v166_v40, %v155_v39 }
 0x355   :  { %169 = vst.msk [vmem:[#allocation4] sm:$0xff] %vm53_vm1, %v167_v41 }
 0x356   :  { %v183_v42 = vpop.xlane.xlu0 %182 }
 0x357   :  { %184 = vst.msk [vmem:[#allocation5] sm:$0xff] %vm53_vm1, %v183_v42 }
 0x35c   :  { %v189_v43 = vld [vmem:[#allocation4] sm:$0xff] }
 0x35d   :  { %242 = vlog2.f32 %v189_v43 }
 0x35e   :  { %v193_v48 = vld [vmem:[#allocation5] sm:$0xff] }
 0x367   :  { %v243_v44 = vpop.eup %242 }
 0x368   :  { %v191_v45 = vmul.f32 0.6931472, %v243_v44 }
 0x36a   :  { %v192_v47 = vadd.f32 %v191_v45, %v188_v46 }
 0x36c   :  { %v194_v49 = vsub.f32 %v192_v47, %v193_v48 }
 0x36e   :  { %195 = vst.msk [vmem:[%s400_s3] sm:$0xff] %vm53_vm1, %v194_v49 }
 0x36f   :  { %314 = dma.done.wait [#allocation8], 128  }
 0x370   :  { %315 = vsyncadd [#allocation8], 4294967168 }
 0x371   :  { %213 = vsyncpa [#allocation7], 1 }
 0x372   :  { %214 = vsyncpa [#allocation10], 1 }
 0x373   :  { %215 = vsyncpa [#allocation8], 1 }

</bundles_post_ra>
